<compile_context>
chip_gen: v5e
topology: v5e:2x2
jax: 0.10.0
libtpu: 0.0.40
codegen_flags: <defaults>
</compile_context>

<pallas_src>
import functools
import math

import jax
import jax.numpy as jnp
from jax.experimental import pallas as pl
from jax.experimental.pallas import tpu as pltpu

POLY_ORDER = 3          # chebyshev, order 3 -> 4 basis functions (T0..T3)
LUT_STEPS = 20000       # lookup-table resolution
LN_EPS = 1e-5


def _round_up(a, m):
    return (a + m - 1) // m * m


def _silu(v):
    # jax.nn.sigmoid lowers to the EUP (transcendental) slot.
    return v * jax.nn.sigmoid(v)


def kan_kernel(stats_ref, x_ref, w_ref, bias_ref, gamma_ref, beta_ref, o_ref,
               *, out_true):
    # stats_ref: SMEM (2,) f32 = [global_min(x), global_max(x)] (hoisted reduce)
    # x_ref:     (TB, F)        f32 input tile
    # w_ref:     (4, F, OUTp)   bf16 stacked weights [base | T1 | T2 | T3]
    # bias_ref:  (1, OUTp)      f32  (folded T0 contribution)
    # gamma/beta:(1, OUTp)      f32  LayerNorm affine
    x = x_ref[...]                                             # (TB, F) f32
    xmin = stats_ref[0]
    xmax = stats_ref[1]

    # ---- global min/max normalization to [-1, 1] ----
    # NOTE: no eps guard on (xmax - xmin), matching the reference module.
    x_norm = 2.0 * (x - xmin) / (xmax - xmin) - 1.0

    # ---- lookup-table quantization, kept entirely in f32 ----
    # floor == trunc (.long()) because the argument is non-negative.
    idx_f = jnp.floor((x_norm + 1.0) * jnp.float32(0.5 * (LUT_STEPS - 1)))
    xq = -1.0 + idx_f * jnp.float32(2.0 / (LUT_STEPS - 1))

    # ---- Chebyshev recurrence (same recurrence that built the table) ----
    # T0 == 1 is folded into bias_ref; only T1..T3 hit the MXU.
    t1 = xq
    t2 = 2.0 * xq * xq - 1.0
    t3 = 2.0 * xq * t2 - t1

    # ---- 4 accumulating bf16 MXU dots (no lane-axis concatenate) ----
    bf = jnp.bfloat16
    acc = jnp.dot(_silu(x).astype(bf), w_ref[0],
                  preferred_element_type=jnp.float32)
    acc = acc + jnp.dot(t1.astype(bf), w_ref[1],
                        preferred_element_type=jnp.float32)
    acc = acc + jnp.dot(t2.astype(bf), w_ref[2],
                        preferred_element_type=jnp.float32)
    acc = acc + jnp.dot(t3.astype(bf), w_ref[3],
                        preferred_element_type=jnp.float32)
    y = acc + bias_ref[...]                                    # (TB, OUTp) f32

    # ---- single-pass LayerNorm over the TRUE out_features + SiLU ----
    # Padded columns of y are exactly zero (zero-padded weights/bias), so the
    # row sums are unaffected; divide by the true feature count.
    inv_n = jnp.float32(1.0 / out_true)
    s1 = jnp.sum(y, axis=-1, keepdims=True)
    s2 = jnp.sum(y * y, axis=-1, keepdims=True)
    mean = s1 * inv_n
    var = s2 * inv_n - mean * mean
    yn = (y - mean) * jax.lax.rsqrt(var + LN_EPS)
    yn = yn * gamma_ref[...] + beta_ref[...]
    o_ref[...] = _silu(yn)                                     # dropout = identity (eval)


def kan_layer_forward(x, w_stack, bias, gamma, beta, *, block_b=512):
    """x: (B, F) f32; w_stack: (4, F, OUT) bf16 = [base|T1|T2|T3] blocks;
    bias/gamma/beta: (1, OUT) f32. Returns (B, OUT) f32."""
    B, F = x.shape
    K, Fw, OUT = w_stack.shape
    assert K == POLY_ORDER + 1 and Fw == F
    x = x.astype(jnp.float32)

    # ---- single-pass global min/max: x is read from HBM once ----
    flat = x.reshape(1, -1)
    mm = jnp.max(jnp.concatenate([flat, -flat], axis=0), axis=1)   # [max(x), -min(x)]
    stats = jnp.stack([-mm[1], mm[0]]).astype(jnp.float32)         # [min, max] -> SMEM

    # ---- pad OUT to a lane-dense multiple of 128 (sliced off at the end) ----
    OUTp = _round_up(OUT, 128)
    if OUTp != OUT:
        pad_n = OUTp - OUT
        w_stack = jnp.pad(w_stack, ((0, 0), (0, 0), (0, pad_n)))
        bias = jnp.pad(bias, ((0, 0), (0, pad_n)))
        gamma = jnp.pad(gamma, ((0, 0), (0, pad_n)))
        beta = jnp.pad(beta, ((0, 0), (0, pad_n)))

    # ---- batch tiling; force >= 2 grid steps so both v7x TCs get work ----
    tb = min(block_b, _round_up(B, 8))
    if _round_up(B, tb) // tb < 2 and B > 8:
        tb = _round_up(pl.cdiv(B, 2), 8)
    Bp = _round_up(B, tb)
    if Bp != B:
        x = jnp.pad(x, ((0, Bp - B), (0, 0)))
    grid = (Bp // tb,)

    # ---- VMEM budget (x/out double-buffered, weights & LN params resident).
    # NOTE: for very large F/OUT, additionally add an OUT grid axis and/or
    # pipeline_mode=pl.Buffered(1) on the resident operands.
    vmem_need = (2 * tb * F * 4 + 2 * tb * OUTp * 4
                 + 2 * (4 * F * OUTp * 2 + 3 * OUTp * 4) + 4096)
    vmem_limit = min(64 * 1024 * 1024,
                     max(32 * 1024 * 1024, int(vmem_need * 3 // 2)))

    cost = pl.CostEstimate(
        flops=2 * Bp * (4 * F) * OUTp + 12 * Bp * (F + OUTp),
        transcendentals=Bp * (F + OUTp),
        bytes_accessed=Bp * F * 4 + Bp * OUTp * 4
                       + 4 * F * OUTp * 2 + 3 * OUTp * 4 + 8,
    )

    kernel = functools.partial(kan_kernel, out_true=OUT)

    out = pl.pallas_call(
        kernel,
        out_shape=jax.ShapeDtypeStruct((Bp, OUTp), jnp.float32),
        grid_spec=pltpu.PrefetchScalarGridSpec(
            num_scalar_prefetch=1,                                   # stats -> SMEM
            grid=grid,
            in_specs=[
                pl.BlockSpec((tb, F), lambda i, stats: (i, 0)),      # x tile
                pl.BlockSpec((4, F, OUTp), lambda i, stats: (0, 0, 0)),  # weights (resident)
                pl.BlockSpec((1, OUTp), lambda i, stats: (0, 0)),    # T0 bias
                pl.BlockSpec((1, OUTp), lambda i, stats: (0, 0)),    # gamma
                pl.BlockSpec((1, OUTp), lambda i, stats: (0, 0)),    # beta
            ],
            out_specs=pl.BlockSpec((tb, OUTp), lambda i, stats: (i, 0)),
        ),
        compiler_params=pltpu.CompilerParams(
            dimension_semantics=("parallel",),
            vmem_limit_bytes=vmem_limit,
        ),
        cost_estimate=cost,
    )(stats, x, w_stack, bias, gamma, beta)
    return out[:B, :OUT]


def init_params(key, in_features, out_features, order=POLY_ORDER):
    """Deterministic kaiming_uniform (nonlinearity='linear') init, like the module.
    Returns stacked bf16 weights (4, F, OUT) = [base|T1|T2|T3], the folded T0
    bias (1, OUT), and LayerNorm gamma/beta (1, OUT)."""
    k1, k2 = jax.random.split(key)
    # base_weights: torch shape (out, in), fan_in = in
    bound_b = math.sqrt(3.0 / in_features)
    base_w = jax.random.uniform(k1, (out_features, in_features),
                                jnp.float32, -bound_b, bound_b)
    # poly_weights: torch shape (out, in*(order+1)), fan_in = in*(order+1)
    fan_in_p = in_features * (order + 1)
    bound_p = math.sqrt(3.0 / fan_in_p)
    poly_w = jax.random.uniform(k2, (out_features, fan_in_p),
                                jnp.float32, -bound_p, bound_p)

    # torch flattens basis as (B, F, K) -> (B, F*K): basis index k fastest.
    poly_w_k = poly_w.reshape(out_features, in_features, order + 1)   # (OUT, F, K)

    # T0 == 1 everywhere -> its matmul contribution is a constant per-column bias.
    bias = jnp.sum(poly_w_k[:, :, 0], axis=1).reshape(1, out_features)  # (1, OUT) f32

    # Stacked (4, F, OUT) weights, stored bf16 for the MXU.
    blocks = [base_w.T] + [poly_w_k[:, :, k].T for k in range(1, order + 1)]
    w_stack = jnp.stack(blocks, axis=0).astype(jnp.bfloat16)           # (4, F, OUT)

    gamma = jnp.ones((1, out_features), jnp.float32)
    beta = jnp.zeros((1, out_features), jnp.float32)
    return w_stack, bias, gamma, beta


def _reference(x, w_stack, bias, gamma, beta):
    """Pure-JAX reference with the module's math (f32 activations; same stored
    weights, cast up to f32)."""
    silu = lambda v: v * jax.nn.sigmoid(v)
    w = w_stack.astype(jnp.float32)
    xmin, xmax = jnp.min(x), jnp.max(x)
    xn = 2.0 * (x - xmin) / (xmax - xmin) - 1.0
    idx = jnp.floor((xn + 1.0) * jnp.float32(0.5 * (LUT_STEPS - 1)))
    xq = -1.0 + idx * jnp.float32(2.0 / (LUT_STEPS - 1))
    t1 = xq
    t2 = 2.0 * xq * xq - 1.0
    t3 = 2.0 * xq * t2 - t1
    y = silu(x) @ w[0] + t1 @ w[1] + t2 @ w[2] + t3 @ w[3] + bias
    mean = jnp.mean(y, axis=-1, keepdims=True)
    var = jnp.mean((y - mean) ** 2, axis=-1, keepdims=True)
    yn = (y - mean) * jax.lax.rsqrt(var + LN_EPS) * gamma + beta
    return silu(yn)


if __name__ == "__main__":
    B, IN_FEATURES, OUT_FEATURES = 16, 32, 128

    key = jax.random.PRNGKey(0)
    kx, kp = jax.random.split(key)
    x = jax.random.normal(kx, (B, IN_FEATURES), jnp.float32)
    w_stack, bias, gamma, beta = init_params(kp, IN_FEATURES, OUT_FEATURES)

    # B=16 -> tb=8 -> grid of 2 parallel batch tiles (keeps both v7x TCs busy).
    out = kan_layer_forward(x, w_stack, bias, gamma, beta, block_b=512)
    jax.block_until_ready(out)

    assert out.shape == (B, OUT_FEATURES) and out.dtype == jnp.float32

    ref = _reference(x, w_stack, bias, gamma, beta)
    max_err = float(jnp.max(jnp.abs(out - ref)))
    assert jnp.allclose(out, ref, rtol=2e-2, atol=2e-2), f"max abs err {max_err}"

    print("KERNEL_OK")
</pallas_src>

<mosaic_0001>
module attributes {stable_mosaic.version = 11 : i64} {
  func.func @kan_kernel(%arg0: i32, %arg1: memref<2xf32, #tpu.memory_space<smem>>, %arg2: memref<8x32xf32, #tpu.memory_space<vmem>>, %arg3: memref<4x32x128xbf16, #tpu.memory_space<vmem>>, %arg4: memref<1x128xf32, #tpu.memory_space<vmem>>, %arg5: memref<1x128xf32, #tpu.memory_space<vmem>>, %arg6: memref<1x128xf32, #tpu.memory_space<vmem>>, %arg7: memref<8x128xf32, #tpu.memory_space<vmem>>) attributes {dimension_semantics = [#tpu.dimension_semantics<parallel>], iteration_bounds = array<i64: 2>, scalar_prefetch = 1 : i64, scratch_operands = 0 : i64, tpu.core_type = #tpu.core_type<tc>, window_params = [{transform_indices = @transform_0, window_bounds = array<i64: 8, 32>}, {pipeline_mode = #tpu.pipeline_mode<synchronous>, transform_indices = @transform_1, window_bounds = array<i64: 4, 32, 128>}, {pipeline_mode = #tpu.pipeline_mode<synchronous>, transform_indices = @transform_2, window_bounds = array<i64: 1, 128>}, {pipeline_mode = #tpu.pipeline_mode<synchronous>, transform_indices = @transform_3, window_bounds = array<i64: 1, 128>}, {pipeline_mode = #tpu.pipeline_mode<synchronous>, transform_indices = @transform_4, window_bounds = array<i64: 1, 128>}, {transform_indices = @transform_5, window_bounds = array<i64: 8, 128>}]} {
    %c0 = arith.constant 0 : index
    %c0_0 = arith.constant 0 : index
    %0 = vector.load %arg2[%c0, %c0_0] : memref<8x32xf32, #tpu.memory_space<vmem>>, vector<8x32xf32>
    %c0_1 = arith.constant 0 : index
    %1 = memref.load %arg1[%c0_1] : memref<2xf32, #tpu.memory_space<smem>>
    %c1 = arith.constant 1 : index
    %2 = memref.load %arg1[%c1] : memref<2xf32, #tpu.memory_space<smem>>
    %3 = vector.broadcast %1 : f32 to vector<8x32xf32>
    %4 = arith.subf %0, %3 : vector<8x32xf32>
    %cst = arith.constant 2.000000e+00 : f32
    %5 = vector.broadcast %cst : f32 to vector<8x32xf32>
    %6 = arith.mulf %5, %4 : vector<8x32xf32>
    %7 = arith.subf %2, %1 : f32
    %8 = vector.broadcast %7 : f32 to vector<8x32xf32>
    %9 = arith.divf %6, %8 : vector<8x32xf32>
    %cst_2 = arith.constant 1.000000e+00 : f32
    %10 = vector.broadcast %cst_2 : f32 to vector<8x32xf32>
    %11 = arith.subf %9, %10 : vector<8x32xf32>
    %cst_3 = arith.constant 1.000000e+00 : f32
    %12 = vector.broadcast %cst_3 : f32 to vector<8x32xf32>
    %13 = arith.addf %11, %12 : vector<8x32xf32>
    %cst_4 = arith.constant 9.999500e+03 : f32
    %14 = vector.broadcast %cst_4 : f32 to vector<8x32xf32>
    %15 = arith.mulf %13, %14 : vector<8x32xf32>
    %16 = math.floor %15 : vector<8x32xf32>
    %cst_5 = arith.constant 1.000050e-04 : f32
    %17 = vector.broadcast %cst_5 : f32 to vector<8x32xf32>
    %18 = arith.mulf %16, %17 : vector<8x32xf32>
    %cst_6 = arith.constant -1.000000e+00 : f32
    %19 = vector.broadcast %cst_6 : f32 to vector<8x32xf32>
    %20 = arith.addf %19, %18 : vector<8x32xf32>
    %cst_7 = arith.constant 2.000000e+00 : f32
    %21 = vector.broadcast %cst_7 : f32 to vector<8x32xf32>
    %22 = arith.mulf %21, %20 : vector<8x32xf32>
    %23 = arith.mulf %22, %20 : vector<8x32xf32>
    %cst_8 = arith.constant 1.000000e+00 : f32
    %24 = vector.broadcast %cst_8 : f32 to vector<8x32xf32>
    %25 = arith.subf %23, %24 : vector<8x32xf32>
    %cst_9 = arith.constant 2.000000e+00 : f32
    %26 = vector.broadcast %cst_9 : f32 to vector<8x32xf32>
    %27 = arith.mulf %26, %20 : vector<8x32xf32>
    %28 = arith.mulf %27, %25 : vector<8x32xf32>
    %29 = arith.subf %28, %20 : vector<8x32xf32>
    %30 = arith.negf %0 : vector<8x32xf32>
    %31 = math.exp %30 : vector<8x32xf32>
    %cst_10 = arith.constant 1.000000e+00 : f32
    %32 = vector.broadcast %cst_10 : f32 to vector<8x32xf32>
    %33 = arith.addf %32, %31 : vector<8x32xf32>
    %34 = arith.divf %32, %33 : vector<8x32xf32>
    %35 = arith.mulf %0, %34 : vector<8x32xf32>
    %36 = arith.truncf %35 : vector<8x32xf32> to vector<8x32xbf16>
    %c0_11 = arith.constant 0 : index
    %c0_12 = arith.constant 0 : index
    %c0_13 = arith.constant 0 : index
    %37 = vector.load %arg3[%c0_11, %c0_12, %c0_13] : memref<4x32x128xbf16, #tpu.memory_space<vmem>>, vector<1x32x128xbf16>
    %38 = vector.shape_cast %37 : vector<1x32x128xbf16> to vector<32x128xbf16>
    %cst_14 = arith.constant dense<0.000000e+00> : vector<8x128xf32>
    %39 = tpu.matmul %36, %38, %cst_14 {dimension_numbers = #tpu.dot_dimension_numbers<[1], [0], [0], [1], [0, 0, 1, 1], [], []>} : vector<8x32xbf16>, vector<32x128xbf16>, vector<8x128xf32> -> vector<8x128xf32>
    %40 = arith.truncf %20 : vector<8x32xf32> to vector<8x32xbf16>
    %c1_15 = arith.constant 1 : index
    %c0_16 = arith.constant 0 : index
    %c0_17 = arith.constant 0 : index
    %41 = vector.load %arg3[%c1_15, %c0_16, %c0_17] : memref<4x32x128xbf16, #tpu.memory_space<vmem>>, vector<1x32x128xbf16>
    %42 = vector.shape_cast %41 : vector<1x32x128xbf16> to vector<32x128xbf16>
    %cst_18 = arith.constant dense<0.000000e+00> : vector<8x128xf32>
    %43 = tpu.matmul %40, %42, %cst_18 {dimension_numbers = #tpu.dot_dimension_numbers<[1], [0], [0], [1], [0, 0, 1, 1], [], []>} : vector<8x32xbf16>, vector<32x128xbf16>, vector<8x128xf32> -> vector<8x128xf32>
    %44 = arith.addf %39, %43 : vector<8x128xf32>
    %45 = arith.truncf %25 : vector<8x32xf32> to vector<8x32xbf16>
    %c2 = arith.constant 2 : index
    %c0_19 = arith.constant 0 : index
    %c0_20 = arith.constant 0 : index
    %46 = vector.load %arg3[%c2, %c0_19, %c0_20] : memref<4x32x128xbf16, #tpu.memory_space<vmem>>, vector<1x32x128xbf16>
    %47 = vector.shape_cast %46 : vector<1x32x128xbf16> to vector<32x128xbf16>
    %cst_21 = arith.constant dense<0.000000e+00> : vector<8x128xf32>
    %48 = tpu.matmul %45, %47, %cst_21 {dimension_numbers = #tpu.dot_dimension_numbers<[1], [0], [0], [1], [0, 0, 1, 1], [], []>} : vector<8x32xbf16>, vector<32x128xbf16>, vector<8x128xf32> -> vector<8x128xf32>
    %49 = arith.addf %44, %48 : vector<8x128xf32>
    %50 = arith.truncf %29 : vector<8x32xf32> to vector<8x32xbf16>
    %c3 = arith.constant 3 : index
    %c0_22 = arith.constant 0 : index
    %c0_23 = arith.constant 0 : index
    %51 = vector.load %arg3[%c3, %c0_22, %c0_23] : memref<4x32x128xbf16, #tpu.memory_space<vmem>>, vector<1x32x128xbf16>
    %52 = vector.shape_cast %51 : vector<1x32x128xbf16> to vector<32x128xbf16>
    %cst_24 = arith.constant dense<0.000000e+00> : vector<8x128xf32>
    %53 = tpu.matmul %50, %52, %cst_24 {dimension_numbers = #tpu.dot_dimension_numbers<[1], [0], [0], [1], [0, 0, 1, 1], [], []>} : vector<8x32xbf16>, vector<32x128xbf16>, vector<8x128xf32> -> vector<8x128xf32>
    %54 = arith.addf %49, %53 : vector<8x128xf32>
    %c0_25 = arith.constant 0 : index
    %c0_26 = arith.constant 0 : index
    %55 = vector.load %arg4[%c0_25, %c0_26] : memref<1x128xf32, #tpu.memory_space<vmem>>, vector<1x128xf32>
    %56 = vector.broadcast %55 : vector<1x128xf32> to vector<8x128xf32>
    %57 = arith.addf %54, %56 : vector<8x128xf32>
    %cst_27 = arith.constant dense<0.000000e+00> : vector<8xf32>
    %58 = vector.multi_reduction <add>, %57, %cst_27 [1] : vector<8x128xf32> to vector<8xf32>
    %59 = vector.shape_cast %58 : vector<8xf32> to vector<8x1xf32>
    %60 = arith.mulf %57, %57 : vector<8x128xf32>
    %cst_28 = arith.constant dense<0.000000e+00> : vector<8xf32>
    %61 = vector.multi_reduction <add>, %60, %cst_28 [1] : vector<8x128xf32> to vector<8xf32>
    %62 = vector.shape_cast %61 : vector<8xf32> to vector<8x1xf32>
    %cst_29 = arith.constant 7.812500e-03 : f32
    %63 = vector.broadcast %cst_29 : f32 to vector<8x1xf32>
    %64 = arith.mulf %59, %63 : vector<8x1xf32>
    %cst_30 = arith.constant 7.812500e-03 : f32
    %65 = vector.broadcast %cst_30 : f32 to vector<8x1xf32>
    %66 = arith.mulf %62, %65 : vector<8x1xf32>
    %67 = arith.mulf %64, %64 : vector<8x1xf32>
    %68 = arith.subf %66, %67 : vector<8x1xf32>
    %69 = vector.broadcast %64 : vector<8x1xf32> to vector<8x128xf32>
    %70 = arith.subf %57, %69 : vector<8x128xf32>
    %cst_31 = arith.constant 9.99999974E-6 : f32
    %71 = vector.broadcast %cst_31 : f32 to vector<8x1xf32>
    %72 = arith.addf %68, %71 : vector<8x1xf32>
    %73 = math.rsqrt %72 : vector<8x1xf32>
    %74 = vector.broadcast %73 : vector<8x1xf32> to vector<8x128xf32>
    %75 = arith.mulf %70, %74 : vector<8x128xf32>
    %c0_32 = arith.constant 0 : index
    %c0_33 = arith.constant 0 : index
    %76 = vector.load %arg5[%c0_32, %c0_33] : memref<1x128xf32, #tpu.memory_space<vmem>>, vector<1x128xf32>
    %77 = vector.broadcast %76 : vector<1x128xf32> to vector<8x128xf32>
    %78 = arith.mulf %75, %77 : vector<8x128xf32>
    %c0_34 = arith.constant 0 : index
    %c0_35 = arith.constant 0 : index
    %79 = vector.load %arg6[%c0_34, %c0_35] : memref<1x128xf32, #tpu.memory_space<vmem>>, vector<1x128xf32>
    %80 = vector.broadcast %79 : vector<1x128xf32> to vector<8x128xf32>
    %81 = arith.addf %78, %80 : vector<8x128xf32>
    %82 = arith.negf %81 : vector<8x128xf32>
    %83 = math.exp %82 : vector<8x128xf32>
    %cst_36 = arith.constant 1.000000e+00 : f32
    %84 = vector.broadcast %cst_36 : f32 to vector<8x128xf32>
    %85 = arith.addf %84, %83 : vector<8x128xf32>
    %86 = arith.divf %84, %85 : vector<8x128xf32>
    %87 = arith.mulf %81, %86 : vector<8x128xf32>
    %c0_37 = arith.constant 0 : index
    %c0_38 = arith.constant 0 : index
    %88 = vector.load %arg7[%c0_37, %c0_38] : memref<8x128xf32, #tpu.memory_space<vmem>>, vector<8x128xf32>
    tpu.vector_store %arg7[%c0_37, %c0_38], %87 {strides = array<i32>} : memref<8x128xf32, #tpu.memory_space<vmem>>, vector<8x128xf32>,
    return
  }
  func.func @transform_0(%arg0: i32, %arg1: memref<2xf32, #tpu.memory_space<smem>>) -> (i32, i32) {
    %c0_i32 = arith.constant 0 : i32
    %c0_i32_0 = arith.constant 0 : i32
    return %arg0, %c0_i32 : i32, i32
  }
  func.func @transform_1(%arg0: i32, %arg1: memref<2xf32, #tpu.memory_space<smem>>) -> (i32, i32, i32) {
    %c0_i32 = arith.constant 0 : i32
    %c0_i32_0 = arith.constant 0 : i32
    %c0_i32_1 = arith.constant 0 : i32
    %c0_i32_2 = arith.constant 0 : i32
    return %c0_i32, %c0_i32_0, %c0_i32_1 : i32, i32, i32
  }
  func.func @transform_2(%arg0: i32, %arg1: memref<2xf32, #tpu.memory_space<smem>>) -> (i32, i32) {
    %c0_i32 = arith.constant 0 : i32
    %c0_i32_0 = arith.constant 0 : i32
    %c0_i32_1 = arith.constant 0 : i32
    return %c0_i32, %c0_i32_0 : i32, i32
  }
  func.func @transform_3(%arg0: i32, %arg1: memref<2xf32, #tpu.memory_space<smem>>) -> (i32, i32) {
    %c0_i32 = arith.constant 0 : i32
    %c0_i32_0 = arith.constant 0 : i32
    %c0_i32_1 = arith.constant 0 : i32
    return %c0_i32, %c0_i32_0 : i32, i32
  }
  func.func @transform_4(%arg0: i32, %arg1: memref<2xf32, #tpu.memory_space<smem>>) -> (i32, i32) {
    %c0_i32 = arith.constant 0 : i32
    %c0_i32_0 = arith.constant 0 : i32
    %c0_i32_1 = arith.constant 0 : i32
    return %c0_i32, %c0_i32_0 : i32, i32
  }
  func.func @transform_5(%arg0: i32, %arg1: memref<2xf32, #tpu.memory_space<smem>>) -> (i32, i32) {
    %c0_i32 = arith.constant 0 : i32
    %c0_i32_0 = arith.constant 0 : i32
    return %arg0, %c0_i32 : i32, i32
  }
}

</mosaic_0001>

<bundles_post_ra>
// kernel: tpu_custom_call.1
= control target key start
LH: loop header
LB: loop body
LE: loop exit
PB: predicated region body
PF: predicated region fallthrough
CT: control target
= control target key end

     0   :  { %s899_s24 = smov [#allocation3]   ;;  %s1090_s0 = inlined_call_operand.hbm [shape: f32[2], index: 0, kind: input, shape index: {}]   ;;  %s1091_s1 = inlined_call_operand.hbm [shape: f32[16,32], index: 1, kind: input, shape index: {}]   ;;  %s1092_s2 = inlined_call_operand.hbm [shape: bf16[4,32,128], index: 2, kind: input, shape index: {}]   ;;  %s1093_s3 = inlined_call_operand.vmem [shape: f32[1,128], index: 3, kind: input, shape index: {}]   ;;  %s1094_s4 = inlined_call_operand.vmem [shape: f32[1,128], index: 4, kind: input, shape index: {}]   ;;  %s1095_s5 = inlined_call_operand.vmem [shape: f32[1,128], index: 5, kind: input, shape index: {}]   ;;  %s1096_s6 = inlined_call_operand.hbm [shape: f32[16,128], index: 6, kind: output, shape index: {}]  }
   0x1   :  { %s12_s23 = sshll.u32 %s1090_s0, 4  ;;  %s13_s23 = int_to_ptr.hbm [resolvable:$true] %s12_s23 }
   0x2   :  { %15 = dma.hbm_to_smem %s13_s23, 16, %s899_s24, [#allocation2] }
   0x3   :  { %869 = dma.done.wait [#allocation2], 16 }
   0x4   :  { %870 = vsyncadd [#allocation2], 4294967280 }
   0x5   :  { %18 = sfence }
   0x6   :  { %19 = vsyncpa [#allocation5], 0 }
   0x7   :  { %21 = vsyncpa [#allocation5 + $0x1], 0 }
   0x8   :  { %22 = vsyncpa [#allocation8], 0 }
   0x9   :  { %23 = vsyncpa [#allocation6], 0 }
   0xa   :  { %25 = vsyncpa [#allocation6 + $0x1], 0  ;;  %s941_s25 = smov 0   ;;  %s943_s26 = smov 0  }
   0xb   :  { %s945_s27 = smov 0   ;;  %s947_s28 = smov 0  }
   0xc LB: > { %s183_s30 = sshll.u32 %s1092_s2, 4  ;;  %s965_s7 = sadd.s32 4294967295, %s897_s28   ;;  %s897_s28 = sphi %s947_s28, %s1106_s28   ;;  %s893_s27 = sphi %s945_s27, %s1105_s27   ;;  %s889_s26 = sphi %s943_s26, %s1104_s26   ;;  %s885_s25 = sphi %s941_s25, %s1103_s25   ;;  %s184_s30 = int_to_ptr.hbm [resolvable:$true] %s183_s30 }
   0xd   : > { %p616_p0 = scmp.ge.s32.totalorder %s897_s28, 1  ;;  %p52_p1 = scmp.eq.s32.totalorder %s965_s7, 0 }
   0xe   : > { %p172_p2 = scmp.lt.s32.totalorder %s897_s28, 3  ;;  %s900_s9 = smov [#allocation7]  }
   0xf   : > { %s185_s10 = sshll.u32 %s900_s9, 4  ;;  %s901_s11 = smov 64   ;;  %s186_s10 = int_to_ptr.vmem [resolvable:$true] %s185_s10 }
  0x10   : > { %p970_p3 = pnand %p616_p0, %p172_p2  ;;  %s902_s12 = smov 4  }
  0x11   : > { %s615_s13 = sadd.s32 4294967294, %s897_s28   ;;  %s981_s14 = sadd.s32 1, %s897_s28  }
  0x12   : > { %p686_p4 = pneg %p970_p3  ;;  %s38_s15 = sadd.s32 1, %s893_s27 }
  0x13   : > { %s35_s16 = ssub.s32 %s897_s28, %s981_s14  ;;  %p45_p7 = scmp.ne.s32.totalorder %s893_s27, %s889_s26 }
  0x14   : > { %p687_p6 = pnand %p686_p4, %p52_p1  ;;  %p36_p8 = scmp.eq.s32.totalorder %s35_s16, 0 }
  0x15   : > { %p46_p9 = scmp.eq.s32.totalorder %s897_s28, 0  ;;  %p51_p10 = scmp.ne.s32.totalorder %s889_s26, %s885_s25 }
  0x16   : > { %689 = dma.hbm_to_vmem [thread:$0]  (!%p687_p6), %s184_s30, 1024, %s186_s10, [#allocation8], %s901_s11, %s901_s11, %s902_s12  }
  0x17   : > { %p159_p11 = scmp.eq.s32.totalorder %s965_s7, 1  ;;  %p997_p12 = por %p52_p1, %p51_p10 }
  0x18   : > { %s993_s17 = scalar_select %p36_p8, %s893_s27, %s38_s15  }
  0x19   : > { %p1001_p13 = por %p159_p11, %p45_p7  ;;  %p165_p0 = scmp.eq.s32.totalorder %s615_s13, 1 }
  0x1a   : > { %p47_p2 = por %p46_p9, %p45_p7  ;;  %s208_s20 = sand.u32 1, %s893_s27  }
  0x1b   : > { %p1006_p4 = por %p165_p0, %p51_p10  ;;  %p699_p6 = scmp.lt.s32.totalorder %s897_s28, 2 }
  0x1c   : > { %s619_s22 = sshll.u32 %s208_s20, 3  ;;  %s620_s23 = sshll.u32 %s897_s28, 3 }
  0x1d   : > { %s216_s29 = scalar_lea.hbm %s1091_s1, %s620_s23  ;;  %s212_s9 = scalar_lea.vmem [#allocation4], %s619_s22 }
  0x1e   : > { %s218_s30 = sshll.u32 %s216_s29, 4  ;;  %s220_s10 = sshll.u32 %s212_s9, 4  ;;  %s219_s30 = int_to_ptr.hbm [resolvable:$true] %s218_s30  ;;  %s221_s10 = int_to_ptr.vmem [resolvable:$true] %s220_s10 }
  0x1f   : > { %p1015_p8 = pnand %p699_p6, %p47_p2  ;;  %s209_s12 = scalar_lea.sflag [#allocation5], %s208_s20 }
  0x20   : > { %s795_s13 = sshra.s32 %s219_s30, 4  ;;  %s802_s22 = scalar_lea.hbm %s1091_s1, 16  ;;  %s796_s13 = int_to_ptr.hbm [resolvable:$true] %s795_s13 }
  0x21   : > { %s797_s15 = scalar_lea.hbm %s796_s13, 8  ;;  %p799_p9 = pneg %p1015_p8 }
  0x22   : > { %p798_p7 = scmp.ne.s32.totalorder %s796_s13, %s797_s15  ;;  %p803_p0 = scmp.lt.s32.totalorder %s796_s13, %s1091_s1 }
  0x23   : > { %p804_p2 = scmp.lt.s32.totalorder %s802_s22, %s797_s15 }
  0x24   : > { %p800_p10 = pnand %p799_p9, %p798_p7 }
  0x25   : > { %p805_p6 = por %p804_p2, %p803_p0 }
  0x26   : > { %p801_p11 = pneg %p800_p10 }
  0x28   : > { %p806_p5 = pnand %p805_p6, %p801_p11 }
  0x2a   : > { %809 = shalt.err (!%p806_p5)
}
  0x2b   : > { %693 = dma.hbm_to_vmem [thread:$0]  (!%p1015_p8), %s219_s30, 128, %s221_s10, %s209_s12  }
  0x2c   : > { %229 = sbr.rel (%p970_p3) target bundleno = 428 (0x1ac), region = 40  ;;  %s1032_s20 = sand.u32 (!%p970_p3), 1, %s889_s26  }
  0x2d   : > { %s622_s29 = sshll.u32 (!%p970_p3), %s1032_s20, 3  ;;  %s232_s9 = scalar_lea.sflag (!%p970_p3), [#allocation5], %s1032_s20 }
  0x2e   : > { %s235_s13 = scalar_lea.vmem (!%p970_p3), [#allocation4], %s622_s29 }
  0x31   : > { %872 = dma.done.wait (%p997_p12), %s232_s9, 128  }
  0x32   : > { %874 = vsyncadd (%p997_p12), %s232_s9, 4294967168 }
  0x33   : > { %876 = dma.done.wait (%p52_p1), [#allocation8], 1024  }
  0x34   : > { %878 = vsyncadd (%p52_p1), [#allocation8], 4294966272  ;;  %s270_s8 = sld [smem:[#allocation3]]  ;;  %v673_v0 = vld [vmem:[#allocation7 + $0x18] sm:$0xff]  ;;  %v671_v1 = vld [vmem:[#allocation7 + $0x8] sm:$0xff]  ;;  %vm346_vm8 = vcmask 261120  }
  0x35   : > { %s625_s30 = sld [smem:[#allocation3 + $0x1]]  ;;  %v675_v2 = vld [vmem:[#allocation7 + $0x28] sm:$0xff]  ;;  %v672_v3 = vld [vmem:[#allocation7 + $0x10] sm:$0xff]  ;;  %v670_v4 = vld [vmem:[#allocation7] sm:$0xff]  ;;  %356 = vmatpush.bf16.msra.mxu0 %v673_v0  ;;  %384 = vmatpush.bf16.msra.mxu1 %v671_v1  ;;  %s667_s22 = sshll.u32 %s965_s7, 3 }
  0x36   : > { %v677_v5 = vld [vmem:[#allocation7 + $0x38] sm:$0xff]  ;;  %418 = vmatpush.bf16.msra.mxu2 %v675_v2  ;;  %v674_v7 = vld [vmem:[#allocation7 + $0x20] sm:$0xff]  ;;  %v676_v12 = vld [vmem:[#allocation7 + $0x30] sm:$0xff]  ;;  %s530_s9 = scalar_lea.hbm %s1096_s6, %s667_s22  ;;  %s520_s7 = scalar_lea.sflag [#allocation6], %s1032_s20 }
  0x37   : > { %v269_v6 = vld [vmem:[%s235_s13] sm:$0xff]  ;;  %453 = vmatpush.bf16.msra.mxu3 %v677_v5  ;;  %s267_s13 = scalar_lea.vmem [#allocation9], %s622_s29  ;;  %s845_s29 = scalar_lea.hbm %s1096_s6, 16 }
  0x38   : > { %v628_v9 = vmul.f32 -1.442695, %v269_v6  ;;  %v738_v60 = vld [vmem:[%s1093_s3] ss:$0 sm:$0xff] }
  0x39   : > { %357 = vmatpush.bf16.msra.mxu0 %v672_v3  ;;  %385 = vmatpush.bf16.msra.mxu1 %v670_v4 }
  0x3a   : > { %419 = vmatpush.bf16.msra.mxu2 %v674_v7  ;;  %v272_v10 = vstv %s270_s8 }
  0x3b   : > { %s275_s10 = ssub.f32 %s625_s30, %s270_s8  ;;  %v273_v15 = vsub.f32 %v269_v6, %v272_v10  ;;  %454 = vmatpush.bf16.msra.mxu3 %v676_v12  ;;  %s532_s8 = sshll.u32 %s267_s13, 4  ;;  %s533_s8 = int_to_ptr.vmem [resolvable:$true] %s532_s8 }
  0x3c   : > { %s534_s30 = sshll.u32 %s530_s9, 4  ;;  %s535_s30 = int_to_ptr.hbm [resolvable:$true] %s534_s30 }
  0x3d   : > { %v276_v8 = vstv %s275_s10  ;;  %v274_v22 = vmul.f32 2.0, %v273_v15  ;;  %s839_s10 = sshra.s32 %s535_s30, 4  ;;  %s840_s10 = int_to_ptr.hbm [resolvable:$true] %s839_s10 }
  0x3e   : > { %741 = vrcp.f32 %v276_v8  ;;  %v288_v16 = vand.u32 2147483648, %v276_v8  ;;  %vm282_vm0 = vweird.f32 %v276_v8  ;;  %v286_v19 = vand.u32 2147483647, %v276_v8  ;;  %s841_s18 = scalar_lea.hbm %s840_s10, 8  ;;  %p846_p12 = scmp.lt.s32.totalorder %s840_s10, %s1096_s6 }
  0x3f   : > { %743 = vpow2.f32 %v628_v9  ;;  %p842_p1 = scmp.ne.s32.totalorder %s840_s10, %s841_s18  ;;  %p847_p8 = scmp.lt.s32.totalorder %s845_s29, %s841_s18 }
  0x40   : > { %v289_v21 = vor.u32 1.1754944e-38, %v288_v16  ;;  %vm287_vm3 = vcmp.eq.f32.partialorder %v286_v19, 8.507059e+37 }
  0x41   : > { %p843_p3 = pnand %p842_p1, %p1001_p13  ;;  %p848_p7 = por %p847_p8, %p846_p12 }
  0x43   : > { %p844_p5 = pneg %p843_p3 }
  0x44   : > { %v742_v11 = vpop.eup %741 }
  0x45   : > { %v744_v13 = vpop.eup %743  ;;  %v278_v14 = vmul.f32 %v742_v11, %v276_v8  ;;  %vm283_vm1 = vweird.f32 %v742_v11  ;;  %p849_p9 = pnand %p848_p7, %p844_p5 }
  0x46   : > { %v306_v17 = vadd.f32 1.0, %v744_v13  ;;  %vm284_vm2 = vmor %vm282_vm0, %vm283_vm1 }
  0x47   : > { %v279_v18 = vsub.f32 1.0, %v278_v14 }
  0x48   : > { %745 = vrcp.f32 %v306_v17  ;;  %vm312_vm4 = vweird.f32 %v306_v17  ;;  %v318_v29 = vand.u32 2147483648, %v306_v17  ;;  %v316_v32 = vand.u32 2147483647, %v306_v17 }
  0x49   : > { %v280_v20 = vmul.f32 %v742_v11, %v279_v18 }
  0x4a   : > { %v319_v35 = vor.u32 1.1754944e-38, %v318_v29  ;;  %vm317_vm7 = vcmp.eq.f32.partialorder %v316_v32, 8.507059e+37 }
  0x4b   : > { %v281_v23 = vadd.f32 %v742_v11, %v280_v20  ;;  %v740_v20 = vld [vmem:[%s1095_s5] ss:$0 sm:$0xff] }
  0x4d   : > { %v285_v24 = vsel %vm284_vm2, %v742_v11, %v281_v23 }
  0x4e   : > { %v746_v25 = vpop.eup %745  ;;  %v290_v26 = vsel %vm287_vm3, %v289_v21, %v285_v24 }
  0x4f   : > { %v291_v27 = vmul.f32 %v290_v26, %v274_v22  ;;  %v308_v28 = vmul.f32 %v746_v25, %v306_v17  ;;  %vm313_vm5 = vweird.f32 %v746_v25  ;;  %v739_v17 = vld [vmem:[%s1094_s4] ss:$0 sm:$0xff] }
  0x50   : > { %vm314_vm6 = vmor %vm312_vm4, %vm313_vm5 }
  0x51   : > { %v626_v30 = vadd.f32 -1.0, %v291_v27  ;;  %v309_v31 = vsub.f32 1.0, %v308_v28 }
  0x53   : > { %v293_v33 = vadd.f32 1.0, %v626_v30  ;;  %v310_v34 = vmul.f32 %v746_v25, %v309_v31 }
  0x55   : > { %v294_v36 = vmul.f32 9999.5, %v293_v33  ;;  %v311_v37 = vadd.f32 %v746_v25, %v310_v34 }
  0x57   : > { %v295_v38 = vfloor.f32 %v294_v36  ;;  %v315_v39 = vsel %vm314_vm6, %v746_v25, %v311_v37 }
  0x58   : > { %v320_v40 = vsel %vm317_vm7, %v319_v35, %v315_v39 }
  0x59   : > { %v296_v41 = vmul.f32 0.000100005, %v295_v38  ;;  %v322_v42 = vmul.f32 %v320_v40, %v269_v6 }
  0x5b   : > { %v297_v43 = vadd.f32 -1.0, %v296_v41  ;;  %v323_v44 = vpack.c.bf16 %v322_v42, %v322_v42 }
  0x5d   : > { %v328_v45 = vpack.c.bf16 %v297_v43, %v297_v43  ;;  %646 = vmatmul.msk.bf16.vlgmr.msra.gmra.mxu1 %vm346_vm8, %v323_v44  ;;  %v298_v46 = vmul.f32 2.0, %v297_v43 }
  0x5f   : > { %637 = vmatmul.msk.bf16.vlgmr.msra.gmra.mxu0 %vm346_vm8, %v328_v45  ;;  %v299_v47 = vmul.f32 %v298_v46, %v297_v43 }
  0x61   : > { %v627_v48 = vadd.f32 -1.0, %v299_v47 }
  0x63   : > { %v391_v49 = vpack.c.bf16 %v627_v48, %v627_v48  ;;  %v301_v50 = vmul.f32 %v627_v48, %v298_v46 }
  0x65   : > { %655 = vmatmul.msk.bf16.vlgmr.msra.gmra.mxu2 %vm346_vm8, %v391_v49  ;;  %v302_v51 = vsub.f32 %v301_v50, %v297_v43 }
  0x67   : > { %v426_v52 = vpack.c.bf16 %v302_v51, %v302_v51 }
  0x69   : > { %664 = vmatmul.msk.bf16.vlgmr.msra.gmra.mxu3 %vm346_vm8, %v426_v52 }
  0xda   : > { %v387_v53 = vpop.f32.mrf.mxu1 }
  0xdc   : > { %v359_v54 = vpop.f32.mrf.mxu0 }
  0xdd   : > { %v388_v57 = vadd.f32 %v387_v53, %v359_v54 }
  0xe2   : > { %v389_v55 = vpop.f32.mrf.mxu1 }
  0xe4   : > { %v361_v56 = vpop.f32.mrf.mxu0 }
  0xe8   : > { %v421_v58 = vpop.f32.mrf.mxu2 }
  0xe9   : > { %v425_v59 = vadd.f32 %v421_v58, %v388_v57 }
  0xec   : > { %v456_v61 = vpop.f32.mrf.mxu3 }
  0xed   : > { %v460_v62 = vadd.f32 %v456_v61, %v425_v59 }
  0xef   : > { %v465_v63 = vadd.f32 %v738_v60, %v460_v62 }
  0xf0   : > { %v423_v0 = vpop.f32.mrf.mxu2 }
  0xf1   : > { %466 = vadd.xlane.f32.xlu0 %v465_v63  ;;  %v468_v2 = vmul.f32 %v465_v63, %v465_v63 }
  0xf4   : > { %v458_v1 = vpop.f32.mrf.mxu3 }
  0xf9   : > { %469 = vadd.xlane.f32.xlu0 %v468_v2 }
 0x164   : > { %v467_v3 = vpop.xlane.xlu0 %466 }
 0x165   : > { %v471_v4 = vmul.f32 0.0078125, %v467_v3 }
 0x167   : > { %v473_v6 = vmul.f32 %v471_v4, %v471_v4  ;;  %v475_v16 = vsub.f32 %v465_v63, %v471_v4 }
 0x16c   : > { %v470_v5 = vpop.xlane.xlu0 %469 }
 0x16d   : > { %v472_v7 = vmul.f32 0.0078125, %v470_v5 }
 0x16f   : > { %v474_v8 = vsub.f32 %v472_v7, %v473_v6 }
 0x171   : > { %v476_v9 = vadd.f32 1e-05, %v474_v8 }
 0x173   : > { %747 = vrsqrt.f32 %v476_v9  ;;  %vm483_vm10 = vweird.f32 %v476_v9 }
 0x179   : > { %v748_v10 = vpop.eup %747 }
 0x17a   : > { %v478_v11 = vmul.f32 %v748_v10, %v476_v9  ;;  %vm484_vm9 = vweird.f32 %v748_v10 }
 0x17b   : > { %vm485_vm11 = vmor %vm483_vm10, %vm484_vm9 }
 0x17c   : > { %v479_v12 = vmul.f32 %v748_v10, %v478_v11 }
 0x17e   : > { %v480_v13 = vmul.f32 0.5, %v479_v12 }
 0x180   : > { %v481_v14 = vsub.f32 1.5, %v480_v13 }
 0x182   : > { %v482_v15 = vmul.f32 %v748_v10, %v481_v14 }
 0x184   : > { %v486_v18 = vsel %vm485_vm11, %v748_v10, %v482_v15 }
 0x185   : > { %v487_v19 = vmul.f32 %v486_v18, %v475_v16 }
 0x187   : > { %v492_v21 = vmul.f32 %v739_v17, %v487_v19 }
 0x189   : > { %v497_v22 = vadd.f32 %v740_v20, %v492_v21 }
 0x18b   : > { %v665_v23 = vmul.f32 -1.442695, %v497_v22 }
 0x18d   : > { %749 = vpow2.f32 %v665_v23 }
 0x193   : > { %v750_v24 = vpop.eup %749 }
 0x194   : > { %v501_v25 = vadd.f32 1.0, %v750_v24 }
 0x196   : > { %751 = vrcp.f32 %v501_v25  ;;  %v513_v29 = vand.u32 2147483648, %v501_v25  ;;  %v511_v31 = vand.u32 2147483647, %v501_v25  ;;  %vm507_vm13 = vweird.f32 %v501_v25 }
 0x198   : > { %v514_v33 = vor.u32 1.1754944e-38, %v513_v29  ;;  %vm512_vm15 = vcmp.eq.f32.partialorder %v511_v31, 8.507059e+37 }
 0x19c   : > { %v752_v26 = vpop.eup %751 }
 0x19d   : > { %v503_v27 = vmul.f32 %v752_v26, %v501_v25  ;;  %vm508_vm12 = vweird.f32 %v752_v26 }
 0x19e   : > { %vm509_vm14 = vmor %vm507_vm13, %vm508_vm12 }
 0x19f   : > { %v504_v28 = vsub.f32 1.0, %v503_v27 }
 0x1a1   : > { %v505_v30 = vmul.f32 %v752_v26, %v504_v28 }
 0x1a3   : > { %v506_v32 = vadd.f32 %v752_v26, %v505_v30 }
 0x1a5   : > { %v510_v34 = vsel %vm509_vm14, %v752_v26, %v506_v32 }
 0x1a6   : > { %v515_v35 = vsel %vm512_vm15, %v514_v33, %v510_v34 }
 0x1a7   : > { %v517_v36 = vmul.f32 %v515_v35, %v497_v22 }
 0x1a9   : > { %518 = vst [vmem:[%s267_s13] sm:$0xff] %v517_v36 }
 0x1aa   : > { %852 = shalt.err (!%p849_p9)
}
 0x1ab   : > { %684 = dma.vmem_to_hbm [thread:$0]  (%p1001_p13), %s533_s8, 128, %s535_s30, %s520_s7  }
 0x1ac PF: > { %s546_s20 = sand.u32 1, %s885_s25   ;;  %p1102_p10 = scmp.ge.s32.totalorder %s897_s28, 2 }
 0x1ad   : > { %s547_s23 = scalar_lea.sflag [#allocation6], %s546_s20 }
 0x1ae   : > { %p695_p11 = pnand %p1102_p10, %p1006_p4 }
 0x1b0   : > { %p696_p0 = pneg %p695_p11 }
 0x1b2   : > { %880 = dma.done.wait (%p696_p0), %s547_s23, 128  }
 0x1b3   : > { %882 = vsyncadd (%p696_p0), %s547_s23, 4294967168  ;;  %p28_p2 = scmp.ge.s32.totalorder %s981_s14, 4   ;;  %s1103_s25 = smov %s889_s26 }
 0x1b4   : > { %s1104_s26 = smov %s893_s27  ;;  %s1105_s27 = smov %s993_s17 }
 0x1b5   : > { %s1106_s28 = smov %s981_s14  ;;  %30 = sbr.rel (!%p28_p2) target bundleno = 12 (0xc), region = 92 }
 0x1ba   :  { %553 = vsyncpa [#allocation5], 1 }
 0x1bb   :  { %555 = vsyncpa [#allocation5 + $0x1], 1 }
 0x1bc   :  { %556 = vsyncpa [#allocation8], 1 }
 0x1bd   :  { %557 = vsyncpa [#allocation6], 1 }
 0x1be   :  { %559 = vsyncpa [#allocation6 + $0x1], 1 }

</bundles_post_ra>
